<compile_context>
chip_gen: v7x
topology: tpu7x:2x2x1
jax: 0.10.0
libtpu: 0.0.40
codegen_flags: <defaults>
</compile_context>

<pallas_src>
import jax
import jax.numpy as jnp
from jax.experimental import pallas as pl
from jax.experimental.pallas import tpu as pltpu

HIDDEN = 50                 # fixed by the PyTorch module
HIDDEN_P = 128              # hidden dim zero-padded to a full lane width
LANE = 128
ROW_ALIGN = 8               # f32 sublane alignment for batch tiles
TB_MAX = 1024               # batch tile upper bound (sweep 512..2048; plateau ~85% roofline)
VMEM_BUDGET_BYTES = 24 << 20    # conservative working-set budget (fits v7x 64 MiB physical)
VMEM_LIMIT_BYTES = 32 << 20     # explicit scoped limit (raises v5e's 16 MiB default)


def _round_up(x, m):
    return (x + m - 1) // m * m


def _vmem_rows_cap(din_p, dout_p, resident_bytes):
    """Max batch-tile rows such that double-buffered streams + intermediates fit budget."""
    per_row = (
        2 * 4 * din_p                       # x: f32, double-buffered
        + 2 * 2 * (dout_p + din_p)          # bf16 enc/dec outputs, double-buffered
        + 4 * (2 * HIDDEN_P + dout_p + din_p)   # f32 intermediates (h1, enc, h2, dec)
    )
    avail = VMEM_BUDGET_BYTES - 2 * resident_bytes   # resident weights/biases (x2 margin)
    return max(ROW_ALIGN, (avail // per_row) // ROW_ALIGN * ROW_ALIGN)


def _pick_tb(bp, cap):
    """Largest batch tile (multiple of 8, <= cap) with small batch-padding waste."""
    cap = max(ROW_ALIGN, (min(cap, bp) // ROW_ALIGN) * ROW_ALIGN)
    max_waste = max(bp // 16, ROW_ALIGN)            # allow <~6% padded rows
    for tb in range(cap, ROW_ALIGN - 1, -ROW_ALIGN):
        if _round_up(bp, tb) - bp <= max_waste:
            return tb
    return ROW_ALIGN


def autoencoder_kernel(x_ref, w1_ref, b1_ref, w2_ref, b2_ref,
                       w3_ref, b3_ref, w4_ref, b4_ref,
                       enc_ref, dec_ref):
    # x arrives f32; cast to bf16 in-kernel (VPU slack) instead of a wrapper HBM pass.
    x = x_ref[...].astype(jnp.bfloat16)                              # (TB, Din_p)

    # ---- encoder ----
    h1 = jnp.dot(x, w1_ref[...], preferred_element_type=jnp.float32) + b1_ref[...]
    h1 = jnp.maximum(h1, 0.0)                                        # ReLU in f32
    enc = jnp.dot(h1.astype(jnp.bfloat16), w2_ref[...],
                  preferred_element_type=jnp.float32) + b2_ref[...]
    enc_ref[...] = enc.astype(enc_ref.dtype)                         # lane-dense bf16 store

    # ---- decoder ----
    h2 = jnp.dot(enc.astype(jnp.bfloat16), w3_ref[...],
                 preferred_element_type=jnp.float32) + b3_ref[...]
    h2 = jnp.maximum(h2, 0.0)                                        # ReLU in f32
    dec = jnp.dot(h2.astype(jnp.bfloat16), w4_ref[...],
                  preferred_element_type=jnp.float32) + b4_ref[...]
    dec_ref[...] = jax.nn.sigmoid(dec).astype(dec_ref.dtype)         # sigmoid (EUP), bf16 store


def simple_autoencoder_forward(x, params, *, tb_max=TB_MAX):
    """x: (B, input_dim) float32. params: dict of f32 weights/biases.
    Returns (encoded, decoded) float32, matching the PyTorch forward."""
    B, input_dim = x.shape
    output_dim = params["w2"].shape[1]

    din_p = _round_up(input_dim, LANE)
    dout_p = _round_up(output_dim, LANE)

    # Zero-padding is numerically exact for Linear (+bias) and ReLU; padded output
    # columns/rows are sliced off in the wrapper before return.
    def pad2(a, r, c):
        return jnp.pad(a, ((0, r - a.shape[0]), (0, c - a.shape[1])))

    w1 = pad2(params["w1"], din_p, HIDDEN_P).astype(jnp.bfloat16)
    b1 = pad2(params["b1"], 1, HIDDEN_P).astype(jnp.float32)
    w2 = pad2(params["w2"], HIDDEN_P, dout_p).astype(jnp.bfloat16)
    b2 = pad2(params["b2"], 1, dout_p).astype(jnp.float32)
    w3 = pad2(params["w3"], dout_p, HIDDEN_P).astype(jnp.bfloat16)
    b3 = pad2(params["b3"], 1, HIDDEN_P).astype(jnp.float32)
    w4 = pad2(params["w4"], HIDDEN_P, din_p).astype(jnp.bfloat16)
    b4 = pad2(params["b4"], 1, din_p).astype(jnp.float32)
    resident = (w1, b1, w2, b2, w3, b3, w4, b4)
    resident_bytes = sum(int(a.size) * a.dtype.itemsize for a in resident)

    # ---- batch tiling ----
    bp = _round_up(B, ROW_ALIGN)                       # 8-row alignment only (x is f32)
    cap = min(tb_max, _vmem_rows_cap(din_p, dout_p, resident_bytes))
    if bp >= 2 * ROW_ALIGN:
        # guarantee >=2 grid steps so "parallel" actually feeds both v7x TensorCores
        cap = min(cap, _round_up(-(-bp // 2), ROW_ALIGN))
    tb = _pick_tb(bp, cap)
    bp = _round_up(bp, tb)
    grid = (bp // tb,)

    # x is padded (rows to bp, features to din_p) but stays f32: no dtype-convert pass.
    xp = jnp.pad(x, ((0, bp - B), (0, din_p - input_dim)))

    def resident_spec(shape):
        # Constant block index -> weights/biases stay VMEM-resident across grid steps.
        return pl.BlockSpec(shape, lambda i: (0, 0))

    flops = 2 * bp * (din_p * HIDDEN_P + HIDDEN_P * dout_p
                      + dout_p * HIDDEN_P + HIDDEN_P * din_p)
    bytes_accessed = (bp * din_p * 4                   # f32 input
                      + bp * (dout_p + din_p) * 2      # bf16 outputs
                      + resident_bytes)

    enc_p, dec_p = pl.pallas_call(
        autoencoder_kernel,
        out_shape=(
            jax.ShapeDtypeStruct((bp, dout_p), jnp.bfloat16),   # encoded (padded, bf16)
            jax.ShapeDtypeStruct((bp, din_p), jnp.bfloat16),    # decoded (padded, bf16)
        ),
        grid=grid,
        in_specs=[
            pl.BlockSpec((tb, din_p), lambda i: (i, 0)),        # x: tiled over batch
            resident_spec(w1.shape), resident_spec(b1.shape),
            resident_spec(w2.shape), resident_spec(b2.shape),
            resident_spec(w3.shape), resident_spec(b3.shape),
            resident_spec(w4.shape), resident_spec(b4.shape),
        ],
        out_specs=(
            pl.BlockSpec((tb, dout_p), lambda i: (i, 0)),
            pl.BlockSpec((tb, din_p), lambda i: (i, 0)),
        ),
        compiler_params=pltpu.CompilerParams(
            dimension_semantics=("parallel",),                  # megacore sharding on v7x
            vmem_limit_bytes=VMEM_LIMIT_BYTES),
        cost_estimate=pl.CostEstimate(
            flops=flops,
            transcendentals=bp * din_p,                         # sigmoid exps
            bytes_accessed=bytes_accessed),
    )(xp, w1, b1, w2, b2, w3, b3, w4, b4)

    # Slice off padding and restore f32 for API parity with the PyTorch module.
    # (Bandwidth-sensitive consumers can take enc_p/dec_p padded bf16 directly.)
    encoded = enc_p[:B, :output_dim].astype(jnp.float32)
    decoded = dec_p[:B, :input_dim].astype(jnp.float32)
    return encoded, decoded


def init_params(key, input_dim, output_dim):
    """Deterministic init; Linear weights stored as (in_features, out_features)."""
    ks = jax.random.split(key, 8)

    def lin(kw, kb, fan_in, fan_out):
        # PyTorch default: U(-1/sqrt(fan_in), 1/sqrt(fan_in))
        bound = 1.0 / jnp.sqrt(jnp.float32(fan_in))
        w = jax.random.uniform(kw, (fan_in, fan_out), jnp.float32, -bound, bound)
        b = jax.random.uniform(kb, (1, fan_out), jnp.float32, -bound, bound)
        return w, b

    w1, b1 = lin(ks[0], ks[1], input_dim, HIDDEN)     # encoder Linear(input_dim, 50)
    w2, b2 = lin(ks[2], ks[3], HIDDEN, output_dim)    # encoder Linear(50, output_dim)
    w3, b3 = lin(ks[4], ks[5], output_dim, HIDDEN)    # decoder Linear(output_dim, 50)
    w4, b4 = lin(ks[6], ks[7], HIDDEN, input_dim)     # decoder Linear(50, input_dim)
    return dict(w1=w1, b1=b1, w2=w2, b2=b2, w3=w3, b3=b3, w4=w4, b4=b4)


def reference_forward(x, p):
    h1 = jnp.maximum(x @ p["w1"] + p["b1"], 0.0)
    enc = h1 @ p["w2"] + p["b2"]
    h2 = jnp.maximum(enc @ p["w3"] + p["b3"], 0.0)
    dec = jax.nn.sigmoid(h2 @ p["w4"] + p["b4"])
    return enc, dec


if __name__ == "__main__":
    batch = 8
    input_dim = 64
    output_dim = 32

    key = jax.random.PRNGKey(0)
    kx, kp = jax.random.split(key)
    x = jax.random.normal(kx, (batch, input_dim), jnp.float32)
    params = init_params(kp, input_dim, output_dim)

    encoded, decoded = simple_autoencoder_forward(x, params)
    jax.block_until_ready((encoded, decoded))

    # correctness check against plain-JAX f32 reference
    enc_ref, dec_ref = reference_forward(x, params)
    assert encoded.shape == (batch, output_dim)
    assert decoded.shape == (batch, input_dim)
    # bf16 MXU operands + bf16 output stores with f32 accumulation -> ~1e-2 agreement
    assert jnp.allclose(encoded, enc_ref, atol=3e-2, rtol=3e-2)
    assert jnp.allclose(decoded, dec_ref, atol=3e-2, rtol=3e-2)

    print("KERNEL_OK")
</pallas_src>

<mosaic_0001>
module attributes {stable_mosaic.version = 11 : i64} {
  func.func @autoencoder_kernel(%arg0: i32, %arg1: memref<8x128xf32, #tpu.memory_space<vmem>>, %arg2: memref<128x128xbf16, #tpu.memory_space<vmem>>, %arg3: memref<1x128xf32, #tpu.memory_space<vmem>>, %arg4: memref<128x128xbf16, #tpu.memory_space<vmem>>, %arg5: memref<1x128xf32, #tpu.memory_space<vmem>>, %arg6: memref<128x128xbf16, #tpu.memory_space<vmem>>, %arg7: memref<1x128xf32, #tpu.memory_space<vmem>>, %arg8: memref<128x128xbf16, #tpu.memory_space<vmem>>, %arg9: memref<1x128xf32, #tpu.memory_space<vmem>>, %arg10: memref<8x128xbf16, #tpu.memory_space<vmem>>, %arg11: memref<8x128xbf16, #tpu.memory_space<vmem>>) attributes {dimension_semantics = [#tpu.dimension_semantics<parallel>], iteration_bounds = array<i64: 1>, scalar_prefetch = 0 : i64, scratch_operands = 0 : i64, tpu.core_type = #tpu.core_type<tc>, window_params = [{transform_indices = @transform_0, window_bounds = array<i64: 8, 128>}, {pipeline_mode = #tpu.pipeline_mode<synchronous>, transform_indices = @transform_1, window_bounds = array<i64: 128, 128>}, {pipeline_mode = #tpu.pipeline_mode<synchronous>, transform_indices = @transform_2, window_bounds = array<i64: 1, 128>}, {pipeline_mode = #tpu.pipeline_mode<synchronous>, transform_indices = @transform_3, window_bounds = array<i64: 128, 128>}, {pipeline_mode = #tpu.pipeline_mode<synchronous>, transform_indices = @transform_4, window_bounds = array<i64: 1, 128>}, {pipeline_mode = #tpu.pipeline_mode<synchronous>, transform_indices = @transform_5, window_bounds = array<i64: 128, 128>}, {pipeline_mode = #tpu.pipeline_mode<synchronous>, transform_indices = @transform_6, window_bounds = array<i64: 1, 128>}, {pipeline_mode = #tpu.pipeline_mode<synchronous>, transform_indices = @transform_7, window_bounds = array<i64: 128, 128>}, {pipeline_mode = #tpu.pipeline_mode<synchronous>, transform_indices = @transform_8, window_bounds = array<i64: 1, 128>}, {transform_indices = @transform_9, window_bounds = array<i64: 8, 128>}, {transform_indices = @transform_10, window_bounds = array<i64: 8, 128>}]} {
    %c0 = arith.constant 0 : index
    %c0_0 = arith.constant 0 : index
    %0 = vector.load %arg1[%c0, %c0_0] : memref<8x128xf32, #tpu.memory_space<vmem>>, vector<8x128xf32>
    %1 = arith.truncf %0 : vector<8x128xf32> to vector<8x128xbf16>
    %c0_1 = arith.constant 0 : index
    %c0_2 = arith.constant 0 : index
    %2 = vector.load %arg2[%c0_1, %c0_2] : memref<128x128xbf16, #tpu.memory_space<vmem>>, vector<128x128xbf16>
    %cst = arith.constant dense<0.000000e+00> : vector<8x128xf32>
    %3 = tpu.matmul %1, %2, %cst {dimension_numbers = #tpu.dot_dimension_numbers<[1], [0], [0], [1], [0, 0, 1, 1], [], []>} : vector<8x128xbf16>, vector<128x128xbf16>, vector<8x128xf32> -> vector<8x128xf32>
    %c0_3 = arith.constant 0 : index
    %c0_4 = arith.constant 0 : index
    %4 = vector.load %arg3[%c0_3, %c0_4] : memref<1x128xf32, #tpu.memory_space<vmem>>, vector<1x128xf32>
    %5 = vector.broadcast %4 : vector<1x128xf32> to vector<8x128xf32>
    %6 = arith.addf %3, %5 : vector<8x128xf32>
    %cst_5 = arith.constant 0.000000e+00 : f32
    %7 = vector.broadcast %cst_5 : f32 to vector<8x128xf32>
    %8 = arith.maximumf %6, %7 : vector<8x128xf32>
    %9 = arith.truncf %8 : vector<8x128xf32> to vector<8x128xbf16>
    %c0_6 = arith.constant 0 : index
    %c0_7 = arith.constant 0 : index
    %10 = vector.load %arg4[%c0_6, %c0_7] : memref<128x128xbf16, #tpu.memory_space<vmem>>, vector<128x128xbf16>
    %cst_8 = arith.constant dense<0.000000e+00> : vector<8x128xf32>
    %11 = tpu.matmul %9, %10, %cst_8 {dimension_numbers = #tpu.dot_dimension_numbers<[1], [0], [0], [1], [0, 0, 1, 1], [], []>} : vector<8x128xbf16>, vector<128x128xbf16>, vector<8x128xf32> -> vector<8x128xf32>
    %c0_9 = arith.constant 0 : index
    %c0_10 = arith.constant 0 : index
    %12 = vector.load %arg5[%c0_9, %c0_10] : memref<1x128xf32, #tpu.memory_space<vmem>>, vector<1x128xf32>
    %13 = vector.broadcast %12 : vector<1x128xf32> to vector<8x128xf32>
    %14 = arith.addf %11, %13 : vector<8x128xf32>
    %15 = arith.truncf %14 : vector<8x128xf32> to vector<8x128xbf16>
    %c0_11 = arith.constant 0 : index
    %c0_12 = arith.constant 0 : index
    %16 = vector.load %arg10[%c0_11, %c0_12] : memref<8x128xbf16, #tpu.memory_space<vmem>>, vector<8x128xbf16>
    tpu.vector_store %arg10[%c0_11, %c0_12], %15 {strides = array<i32>} : memref<8x128xbf16, #tpu.memory_space<vmem>>, vector<8x128xbf16>,
    %17 = arith.truncf %14 : vector<8x128xf32> to vector<8x128xbf16>
    %c0_13 = arith.constant 0 : index
    %c0_14 = arith.constant 0 : index
    %18 = vector.load %arg6[%c0_13, %c0_14] : memref<128x128xbf16, #tpu.memory_space<vmem>>, vector<128x128xbf16>
    %cst_15 = arith.constant dense<0.000000e+00> : vector<8x128xf32>
    %19 = tpu.matmul %17, %18, %cst_15 {dimension_numbers = #tpu.dot_dimension_numbers<[1], [0], [0], [1], [0, 0, 1, 1], [], []>} : vector<8x128xbf16>, vector<128x128xbf16>, vector<8x128xf32> -> vector<8x128xf32>
    %c0_16 = arith.constant 0 : index
    %c0_17 = arith.constant 0 : index
    %20 = vector.load %arg7[%c0_16, %c0_17] : memref<1x128xf32, #tpu.memory_space<vmem>>, vector<1x128xf32>
    %21 = vector.broadcast %20 : vector<1x128xf32> to vector<8x128xf32>
    %22 = arith.addf %19, %21 : vector<8x128xf32>
    %cst_18 = arith.constant 0.000000e+00 : f32
    %23 = vector.broadcast %cst_18 : f32 to vector<8x128xf32>
    %24 = arith.maximumf %22, %23 : vector<8x128xf32>
    %25 = arith.truncf %24 : vector<8x128xf32> to vector<8x128xbf16>
    %c0_19 = arith.constant 0 : index
    %c0_20 = arith.constant 0 : index
    %26 = vector.load %arg8[%c0_19, %c0_20] : memref<128x128xbf16, #tpu.memory_space<vmem>>, vector<128x128xbf16>
    %cst_21 = arith.constant dense<0.000000e+00> : vector<8x128xf32>
    %27 = tpu.matmul %25, %26, %cst_21 {dimension_numbers = #tpu.dot_dimension_numbers<[1], [0], [0], [1], [0, 0, 1, 1], [], []>} : vector<8x128xbf16>, vector<128x128xbf16>, vector<8x128xf32> -> vector<8x128xf32>
    %c0_22 = arith.constant 0 : index
    %c0_23 = arith.constant 0 : index
    %28 = vector.load %arg9[%c0_22, %c0_23] : memref<1x128xf32, #tpu.memory_space<vmem>>, vector<1x128xf32>
    %29 = vector.broadcast %28 : vector<1x128xf32> to vector<8x128xf32>
    %30 = arith.addf %27, %29 : vector<8x128xf32>
    %31 = arith.negf %30 : vector<8x128xf32>
    %32 = math.exp %31 : vector<8x128xf32>
    %cst_24 = arith.constant 1.000000e+00 : f32
    %33 = vector.broadcast %cst_24 : f32 to vector<8x128xf32>
    %34 = arith.addf %33, %32 : vector<8x128xf32>
    %35 = arith.divf %33, %34 : vector<8x128xf32>
    %36 = arith.truncf %35 : vector<8x128xf32> to vector<8x128xbf16>
    %c0_25 = arith.constant 0 : index
    %c0_26 = arith.constant 0 : index
    %37 = vector.load %arg11[%c0_25, %c0_26] : memref<8x128xbf16, #tpu.memory_space<vmem>>, vector<8x128xbf16>
    tpu.vector_store %arg11[%c0_25, %c0_26], %36 {strides = array<i32>} : memref<8x128xbf16, #tpu.memory_space<vmem>>, vector<8x128xbf16>,
    return
  }
  func.func @transform_0(%arg0: i32) -> (i32, i32) {
    %c0_i32 = arith.constant 0 : i32
    %c0_i32_0 = arith.constant 0 : i32
    return %arg0, %c0_i32 : i32, i32
  }
  func.func @transform_1(%arg0: i32) -> (i32, i32) {
    %c0_i32 = arith.constant 0 : i32
    %c0_i32_0 = arith.constant 0 : i32
    %c0_i32_1 = arith.constant 0 : i32
    return %c0_i32, %c0_i32_0 : i32, i32
  }
  func.func @transform_2(%arg0: i32) -> (i32, i32) {
    %c0_i32 = arith.constant 0 : i32
    %c0_i32_0 = arith.constant 0 : i32
    %c0_i32_1 = arith.constant 0 : i32
    return %c0_i32, %c0_i32_0 : i32, i32
  }
  func.func @transform_3(%arg0: i32) -> (i32, i32) {
    %c0_i32 = arith.constant 0 : i32
    %c0_i32_0 = arith.constant 0 : i32
    %c0_i32_1 = arith.constant 0 : i32
    return %c0_i32, %c0_i32_0 : i32, i32
  }
  func.func @transform_4(%arg0: i32) -> (i32, i32) {
    %c0_i32 = arith.constant 0 : i32
    %c0_i32_0 = arith.constant 0 : i32
    %c0_i32_1 = arith.constant 0 : i32
    return %c0_i32, %c0_i32_0 : i32, i32
  }
  func.func @transform_5(%arg0: i32) -> (i32, i32) {
    %c0_i32 = arith.constant 0 : i32
    %c0_i32_0 = arith.constant 0 : i32
    %c0_i32_1 = arith.constant 0 : i32
    return %c0_i32, %c0_i32_0 : i32, i32
  }
  func.func @transform_6(%arg0: i32) -> (i32, i32) {
    %c0_i32 = arith.constant 0 : i32
    %c0_i32_0 = arith.constant 0 : i32
    %c0_i32_1 = arith.constant 0 : i32
    return %c0_i32, %c0_i32_0 : i32, i32
  }
  func.func @transform_7(%arg0: i32) -> (i32, i32) {
    %c0_i32 = arith.constant 0 : i32
    %c0_i32_0 = arith.constant 0 : i32
    %c0_i32_1 = arith.constant 0 : i32
    return %c0_i32, %c0_i32_0 : i32, i32
  }
  func.func @transform_8(%arg0: i32) -> (i32, i32) {
    %c0_i32 = arith.constant 0 : i32
    %c0_i32_0 = arith.constant 0 : i32
    %c0_i32_1 = arith.constant 0 : i32
    return %c0_i32, %c0_i32_0 : i32, i32
  }
  func.func @transform_9(%arg0: i32) -> (i32, i32) {
    %c0_i32 = arith.constant 0 : i32
    %c0_i32_0 = arith.constant 0 : i32
    return %arg0, %c0_i32 : i32, i32
  }
  func.func @transform_10(%arg0: i32) -> (i32, i32) {
    %c0_i32 = arith.constant 0 : i32
    %c0_i32_0 = arith.constant 0 : i32
    return %arg0, %c0_i32 : i32, i32
  }
}

</mosaic_0001>

<bundles_post_ra>
// kernel: tpu_custom_call.1
= control target key start
LH: loop header
LB: loop body
LE: loop exit
PB: predicated region body
PF: predicated region fallthrough
CT: control target
= control target key end

     0   :  { %16 = vsyncpa [#allocation3], 0  ;;  %s1172_s0 = inlined_call_operand.hbm [shape: f32[8,128], index: 0, kind: input, shape index: {}]   ;;  %s1173_s1 = inlined_call_operand.hbm [shape: bf16[128,128], index: 1, kind: input, shape index: {}]   ;;  %s1174_s2 = inlined_call_operand.vmem [shape: f32[1,128], index: 2, kind: input, shape index: {}]   ;;  %s1175_s3 = inlined_call_operand.hbm [shape: bf16[128,128], index: 3, kind: input, shape index: {}]   ;;  %s1176_s4 = inlined_call_operand.vmem [shape: f32[1,128], index: 4, kind: input, shape index: {}]   ;;  %s1177_s5 = inlined_call_operand.hbm [shape: bf16[128,128], index: 5, kind: input, shape index: {}]   ;;  %s1178_s6 = inlined_call_operand.vmem [shape: f32[1,128], index: 6, kind: input, shape index: {}]   ;;  %s1179_s7 = inlined_call_operand.hbm [shape: bf16[128,128], index: 7, kind: input, shape index: {}]   ;;  %s1180_s8 = inlined_call_operand.vmem [shape: f32[1,128], index: 8, kind: input, shape index: {}]   ;;  %s1181_s9 = inlined_call_operand.hbm [shape: bf16[8,128], index: 9, kind: output, shape index: {0}]   ;;  %s1182_s10 = inlined_call_operand.hbm [shape: bf16[8,128], index: 10, kind: output, shape index: {1}]  }
   0x1   :  { %17 = vsyncpa [#allocation6], 0 }
   0x2   :  { %18 = vsyncpa [#allocation9], 0 }
   0x3   :  { %19 = vsyncpa [#allocation4], 0 }
   0x4   :  { %20 = vsyncpa [#allocation13], 0  ;;  %s958_s13 = smov [#allocation5]   ;;  %s794_s17 = scalar_lea.hbm %s1173_s1, 1024 }
   0x5   :  { %s36_s14 = sshll.u32 %s958_s13, 4  ;;  %p795_p0 = scmp.ne.s32.totalorder %s1173_s1, %s794_s17  ;;  %s37_s14 = int_to_ptr.vmem [resolvable:$true] %s36_s14 }
   0x6   :  { %p798_p1 = scmp.lt.u32.totalorder %s794_s17, %s1173_s1 }
   0x8   :  { %p800_p2 = pnand %p798_p1, %p795_p0 }
   0xa   :  { %803 = shalt.err (!%p800_p2)
}
   0xb   :  { %s804_s22 = scalar_lea.vmem %s37_s14, 1024  ;;  %p809_p4 = scmp.lt.s32.totalorder %s37_s14, %s37_s14 }
   0xc   :  { %p805_p3 = scmp.ne.s32.totalorder %s37_s14, %s804_s22  ;;  %p810_p5 = scmp.lt.s32.totalorder %s804_s22, %s804_s22 }
   0xe   :  { %p811_p6 = por %p810_p5, %p809_p4 }
  0x10   :  { %p812_p7 = pnand %p811_p6, %p805_p3 }
  0x12   :  { %815 = shalt.err (!%p812_p7)
}
  0x13   :  { %s959_s23 = smov 64   ;;  %s960_s24 = smov 4  }
  0x14   :  { %42 = dma.hbm_to_vmem [thread:$0]  %s1173_s1, 1024, %s37_s14, [#allocation6], %s959_s23, %s959_s23, %s960_s24  }
  0x15   :  { %s961_s27 = smov [#allocation8]   ;;  %s962_s29 = smov [#allocation2]  }
  0x16   :  { %s64_s28 = sshll.u32 %s961_s27, 4  ;;  %s27_s30 = sshll.u32 %s962_s29, 4  ;;  %s65_s28 = int_to_ptr.vmem [resolvable:$true] %s64_s28  ;;  %s28_s30 = int_to_ptr.vmem [resolvable:$true] %s27_s30 }
  0x17   :  { %s816_s13 = scalar_lea.hbm %s1177_s5, 1024 }
  0x18   :  { %p817_p8 = scmp.ne.s32.totalorder %s1177_s5, %s816_s13  ;;  %p820_p9 = scmp.lt.u32.totalorder %s816_s13, %s1177_s5 }
  0x1a   :  { %p822_p10 = pnand %p820_p9, %p817_p8 }
  0x1c   :  { %825 = shalt.err (!%p822_p10)
}
  0x1d   :  { %s826_s1 = scalar_lea.vmem %s65_s28, 1024  ;;  %p831_p12 = scmp.lt.s32.totalorder %s65_s28, %s65_s28 }
  0x1e   :  { %p827_p11 = scmp.ne.s32.totalorder %s65_s28, %s826_s1  ;;  %p832_p13 = scmp.lt.s32.totalorder %s826_s1, %s826_s1 }
  0x20   :  { %p833_p0 = por %p832_p13, %p831_p12 }
  0x22   :  { %p834_p1 = pnand %p833_p0, %p827_p11 }
  0x24   :  { %837 = shalt.err (!%p834_p1)
}
  0x25   :  { %70 = dma.hbm_to_vmem [thread:$0]  %s1177_s5, 1024, %s65_s28, [#allocation9], %s959_s23, %s959_s23, %s960_s24  }
  0x26   :  { %s838_s22 = scalar_lea.hbm %s1172_s0, 128 }
  0x27   :  { %p839_p2 = scmp.ne.s32.totalorder %s1172_s0, %s838_s22  ;;  %p842_p3 = scmp.lt.u32.totalorder %s838_s22, %s1172_s0 }
  0x29   :  { %p844_p4 = pnand %p842_p3, %p839_p2 }
  0x2b   :  { %847 = shalt.err (!%p844_p4)
}
  0x2c   :  { %s848_s11 = scalar_lea.vmem %s28_s30, 128  ;;  %p853_p6 = scmp.lt.s32.totalorder %s28_s30, %s28_s30 }
  0x2d   :  { %p849_p5 = scmp.ne.s32.totalorder %s28_s30, %s848_s11  ;;  %p854_p7 = scmp.lt.s32.totalorder %s848_s11, %s848_s11 }
  0x2f   :  { %p855_p8 = por %p854_p7, %p853_p6 }
  0x31   :  { %p856_p9 = pnand %p855_p8, %p849_p5 }
  0x33   :  { %859 = shalt.err (!%p856_p9)
}
  0x34   :  { %30 = dma.hbm_to_vmem [thread:$0]  %s1172_s0, 128, %s28_s30, [#allocation3]  }
  0x35   :  { %s963_s12 = smov [#allocation7]   ;;  %s964_s15 = smov [#allocation10]  }
  0x36   :  { %s50_s13 = sshll.u32 %s963_s12, 4  ;;  %s78_s16 = sshll.u32 %s964_s15, 4  ;;  %s51_s13 = int_to_ptr.vmem [resolvable:$true] %s50_s13  ;;  %s79_s16 = int_to_ptr.vmem [resolvable:$true] %s78_s16 }
  0x37   :  { %s860_s1 = scalar_lea.hbm %s1175_s3, 1024 }
  0x38   :  { %p861_p10 = scmp.ne.s32.totalorder %s1175_s3, %s860_s1  ;;  %p864_p11 = scmp.lt.u32.totalorder %s860_s1, %s1175_s3 }
  0x3a   :  { %p866_p12 = pnand %p864_p11, %p861_p10 }
  0x3c   :  { %869 = shalt.err (!%p866_p12)
}
  0x3d   :  { %s870_s0 = scalar_lea.vmem %s51_s13, 1024  ;;  %p875_p0 = scmp.lt.s32.totalorder %s51_s13, %s51_s13 }
  0x3e   :  { %p871_p13 = scmp.ne.s32.totalorder %s51_s13, %s870_s0  ;;  %p876_p1 = scmp.lt.s32.totalorder %s870_s0, %s870_s0 }
  0x40   :  { %p877_p2 = por %p876_p1, %p875_p0 }
  0x42   :  { %p878_p3 = pnand %p877_p2, %p871_p13 }
  0x44   :  { %881 = shalt.err (!%p878_p3)
}
  0x45   :  { %56 = dma.hbm_to_vmem [thread:$0]  %s1175_s3, 1024, %s51_s13, [#allocation6], %s959_s23, %s959_s23, %s960_s24  }
  0x46   :  { %s882_s27 = scalar_lea.hbm %s1179_s7, 1024 }
  0x47   :  { %p883_p4 = scmp.ne.s32.totalorder %s1179_s7, %s882_s27  ;;  %p886_p5 = scmp.lt.u32.totalorder %s882_s27, %s1179_s7 }
  0x49   :  { %p888_p6 = pnand %p886_p5, %p883_p4 }
  0x4b   :  { %891 = shalt.err (!%p888_p6)
}
  0x4c   :  { %s892_s12 = scalar_lea.vmem %s79_s16, 1024  ;;  %p897_p8 = scmp.lt.s32.totalorder %s79_s16, %s79_s16 }
  0x4d   :  { %p893_p7 = scmp.ne.s32.totalorder %s79_s16, %s892_s12  ;;  %p898_p9 = scmp.lt.s32.totalorder %s892_s12, %s892_s12 }
  0x4f   :  { %p899_p10 = por %p898_p9, %p897_p8 }
  0x51   :  { %p900_p11 = pnand %p899_p10, %p893_p7 }
  0x53   :  { %903 = shalt.err (!%p900_p11)
}
  0x54   :  { %84 = dma.hbm_to_vmem [thread:$0]  %s1179_s7, 1024, %s79_s16, [#allocation9], %s959_s23, %s959_s23, %s960_s24  }
  0x55   :  { %948 = dma.done.wait [#allocation3], 128  }
  0x56   :  { %949 = vsyncadd [#allocation3], 4294967168 }
  0x57   :  { %950 = dma.done.wait [#allocation6], 2048  }
  0x58   :  { %951 = vsyncadd [#allocation6], 4294965248 }
  0x59   :  { %952 = dma.done.wait [#allocation9], 2048  }
  0x5a   :  { %953 = vsyncadd [#allocation9], 4294965248  ;;  %v965_v0 = vmov 0.0   ;;  %vm966_vm0 = vmmov 0   ;;  %v758_v1 = vld [vmem:[#allocation5] sm:$0xff]   ;;  %v759_v2 = vld [vmem:[#allocation5 + $0x8] sm:$0xff]  }
  0x5b   :  { %667 = vmatprep.subr.bf16.mxu0 %v965_v0  ;;  %683 = vmatprep.mubr.msk.bf16.mxu0 %vm966_vm0, %v965_v0  ;;  %v760_v3 = vld [vmem:[#allocation5 + $0x10] sm:$0xff]   ;;  %v766_v4 = vld [vmem:[#allocation7] sm:$0xff]   ;;  %v761_v5 = vld [vmem:[#allocation5 + $0x18] sm:$0xff]  }
  0x5c   :  { %687 = vmatprep.subr.bf16.mxu1 %v965_v0  ;;  %703 = vmatprep.mubr.msk.bf16.mxu1 %vm966_vm0, %v965_v0  ;;  %v767_v6 = vld [vmem:[#allocation7 + $0x8] sm:$0xff]   ;;  %v762_v7 = vld [vmem:[#allocation5 + $0x20] sm:$0xff]   ;;  %v768_v8 = vld [vmem:[#allocation7 + $0x10] sm:$0xff]  }
  0x5d   :  { %668 = vmatpush3.bf16.msra.mxu0 %v758_v1  ;;  %688 = vmatpush3.bf16.msra.mxu1 %v766_v4  ;;  %v763_v9 = vld [vmem:[#allocation5 + $0x28] sm:$0xff]   ;;  %v769_v10 = vld [vmem:[#allocation7 + $0x18] sm:$0xff]   ;;  %v764_v11 = vld [vmem:[#allocation5 + $0x30] sm:$0xff]  }
  0x5e   :  { %669 = vmatprep.subr.bf16.mxu0 %v965_v0  ;;  %689 = vmatprep.subr.bf16.mxu1 %v965_v0  ;;  %v770_v12 = vld [vmem:[#allocation7 + $0x20] sm:$0xff]   ;;  %v765_v13 = vld [vmem:[#allocation5 + $0x38] sm:$0xff]   ;;  %v771_v15 = vld [vmem:[#allocation7 + $0x28] sm:$0xff]  }
  0x5f   :  { %v103_v14 = vld [vmem:[#allocation2] sm:$0xff]  ;;  %v772_v17 = vld [vmem:[#allocation7 + $0x30] sm:$0xff]   ;;  %v774_v19 = vld [vmem:[#allocation8] sm:$0xff]  }
  0x60   :  { %v104_v16 = vpack.c.bf16 %v103_v14, %v103_v14  ;;  %v773_v18 = vld [vmem:[#allocation7 + $0x38] sm:$0xff]   ;;  %v775_v20 = vld [vmem:[#allocation8 + $0x8] sm:$0xff]   ;;  %v776_v21 = vld [vmem:[#allocation8 + $0x10] sm:$0xff]  }
  0x61   :  { %670 = vmatpush3.bf16.msra.mxu0 %v759_v2  ;;  %690 = vmatpush3.bf16.msra.mxu1 %v767_v6  ;;  %v777_v22 = vld [vmem:[#allocation8 + $0x18] sm:$0xff]   ;;  %v778_v23 = vld [vmem:[#allocation8 + $0x20] sm:$0xff]   ;;  %v779_v24 = vld [vmem:[#allocation8 + $0x28] sm:$0xff]  }
  0x62   :  { %671 = vmatprep.subr.bf16.mxu0 %v965_v0  ;;  %691 = vmatprep.subr.bf16.mxu1 %v965_v0  ;;  %v780_v25 = vld [vmem:[#allocation8 + $0x30] sm:$0xff]   ;;  %v594_v26 = vld [vmem:[%s1174_s2] ss:$0 sm:$0xff]  ;;  %v782_v35 = vld [vmem:[#allocation10] sm:$0xff]  }
  0x63   :  { %v781_v34 = vld [vmem:[#allocation8 + $0x38] sm:$0xff]   ;;  %v783_v36 = vld [vmem:[#allocation10 + $0x8] sm:$0xff]   ;;  %v784_v37 = vld [vmem:[#allocation10 + $0x10] sm:$0xff]  }
  0x64   :  { %v785_v38 = vld [vmem:[#allocation10 + $0x18] sm:$0xff]   ;;  %v786_v39 = vld [vmem:[#allocation10 + $0x20] sm:$0xff]   ;;  %v787_v40 = vld [vmem:[#allocation10 + $0x28] sm:$0xff]  }
  0x65   :  { %672 = vmatpush3.bf16.msra.mxu0 %v760_v3  ;;  %692 = vmatpush3.bf16.msra.mxu1 %v768_v8  ;;  %v603_v41 = vld [vmem:[%s1176_s4] ss:$0 sm:$0xff]  ;;  %v788_v48 = vld [vmem:[#allocation10 + $0x30] sm:$0xff]   ;;  %s967_s4 = smov [#allocation11]  }
  0x66   :  { %673 = vmatprep.subr.bf16.mxu0 %v965_v0  ;;  %693 = vmatprep.subr.bf16.mxu1 %v965_v0  ;;  %v789_v49 = vld [vmem:[#allocation10 + $0x38] sm:$0xff]   ;;  %s569_s17 = sshll.u32 %s967_s4, 4  ;;  %s570_s17 = int_to_ptr.vmem [resolvable:$true] %s569_s17 }
  0x67   :  { %v612_v50 = vld [vmem:[%s1178_s6] ss:$0 sm:$0xff]  ;;  %s904_s18 = scalar_lea.vmem %s570_s17, 64  ;;  %p909_p13 = scmp.lt.s32.totalorder %s570_s17, %s570_s17 }
  0x68   :  { %p905_p12 = scmp.ne.s32.totalorder %s570_s17, %s904_s18  ;;  %p910_p0 = scmp.lt.s32.totalorder %s904_s18, %s904_s18 }
  0x69   :  { %674 = vmatpush3.bf16.msra.mxu0 %v761_v5  ;;  %694 = vmatpush3.bf16.msra.mxu1 %v769_v10 }
  0x6a   :  { %675 = vmatprep.subr.bf16.mxu0 %v965_v0  ;;  %695 = vmatprep.subr.bf16.mxu1 %v965_v0  ;;  %p911_p1 = por %p910_p0, %p909_p13 }
  0x6c   :  { %p912_p2 = pnand %p911_p1, %p905_p12 }
  0x6d   :  { %676 = vmatpush3.bf16.msra.mxu0 %v762_v7  ;;  %696 = vmatpush3.bf16.msra.mxu1 %v770_v12 }
  0x6e   :  { %677 = vmatprep.subr.bf16.mxu0 %v965_v0  ;;  %697 = vmatprep.subr.bf16.mxu1 %v965_v0 }
  0x71   :  { %678 = vmatpush3.bf16.msra.mxu0 %v763_v9  ;;  %698 = vmatpush3.bf16.msra.mxu1 %v771_v15 }
  0x72   :  { %679 = vmatprep.subr.bf16.mxu0 %v965_v0  ;;  %699 = vmatprep.subr.bf16.mxu1 %v965_v0 }
  0x75   :  { %680 = vmatpush3.bf16.msra.mxu0 %v764_v11  ;;  %700 = vmatpush3.bf16.msra.mxu1 %v772_v17 }
  0x76   :  { %681 = vmatprep.subr.bf16.mxu0 %v965_v0  ;;  %701 = vmatprep.subr.bf16.mxu1 %v965_v0 }
  0x79   :  { %682 = vmatpush3.bf16.msra.mxu0 %v765_v13  ;;  %702 = vmatpush3.bf16.msra.mxu1 %v773_v18 }
  0x7a   :  { %707 = vmatprep.subr.bf16.mxu0 %v965_v0  ;;  %727 = vmatprep.subr.bf16.mxu1 %v965_v0 }
  0x7c   :  { %684 = vmatmul.mubr.bf16.vlgmr.msra.gmra.mrb[0].mxu0 %v104_v16 }
  0x7d   :  { %723 = vmatprep.mubr.msk.bf16.mxu0 %vm966_vm0, %v965_v0  ;;  %708 = vmatpush3.bf16.msra.mxu0 %v774_v19 }
  0x7e   :  { %709 = vmatprep.subr.bf16.mxu0 %v965_v0 }
  0x81   :  { %710 = vmatpush3.bf16.msra.mxu0 %v775_v20 }
  0x82   :  { %711 = vmatprep.subr.bf16.mxu0 %v965_v0 }
  0x85   :  { %712 = vmatpush3.bf16.msra.mxu0 %v776_v21 }
  0x86   :  { %713 = vmatprep.subr.bf16.mxu0 %v965_v0 }
  0x89   :  { %714 = vmatpush3.bf16.msra.mxu0 %v777_v22 }
  0x8a   :  { %715 = vmatprep.subr.bf16.mxu0 %v965_v0 }
  0x8d   :  { %716 = vmatpush3.bf16.msra.mxu0 %v778_v23 }
  0x8e   :  { %717 = vmatprep.subr.bf16.mxu0 %v965_v0 }
  0x91   :  { %718 = vmatpush3.bf16.msra.mxu0 %v779_v24 }
  0x92   :  { %719 = vmatprep.subr.bf16.mxu0 %v965_v0 }
  0x95   :  { %720 = vmatpush3.bf16.msra.mxu0 %v780_v25 }
  0x96   :  { %721 = vmatprep.subr.bf16.mxu0 %v965_v0 }
  0x99   :  { %722 = vmatpush3.bf16.msra.mxu0 %v781_v34 }
 0x14f   :  { %v210_v27 = vpop.f32.mrb[0].mxu0 }
 0x150   :  { %v211_v28 = vadd.f32 %v594_v26, %v210_v27  ;;  %v685_v29 = vpop.f32.mrb[1].mxu0 }
 0x151   :  { %v213_v30 = vpop.f32.mrb[2].mxu0 }
 0x152   :  { %v216_v31 = vmax.f32 %v211_v28, 0.0  ;;  %v686_v32 = vpop.f32.mrb[3].mxu0 }
 0x154   :  { %v217_v33 = vpack.c.bf16 %v216_v31, %v216_v31 }
 0x156   :  { %704 = vmatmul.mubr.bf16.vlgmr.msra.gmra.mrb[0].mxu1 %v217_v33 }
 0x157   :  { %743 = vmatprep.mubr.msk.bf16.mxu1 %vm966_vm0, %v965_v0  ;;  %728 = vmatpush3.bf16.msra.mxu1 %v782_v35 }
 0x158   :  { %729 = vmatprep.subr.bf16.mxu1 %v965_v0 }
 0x15b   :  { %730 = vmatpush3.bf16.msra.mxu1 %v783_v36 }
 0x15c   :  { %731 = vmatprep.subr.bf16.mxu1 %v965_v0 }
 0x15f   :  { %732 = vmatpush3.bf16.msra.mxu1 %v784_v37 }
 0x160   :  { %733 = vmatprep.subr.bf16.mxu1 %v965_v0 }
 0x163   :  { %734 = vmatpush3.bf16.msra.mxu1 %v785_v38 }
 0x164   :  { %735 = vmatprep.subr.bf16.mxu1 %v965_v0 }
 0x167   :  { %736 = vmatpush3.bf16.msra.mxu1 %v786_v39 }
 0x168   :  { %737 = vmatprep.subr.bf16.mxu1 %v965_v0 }
 0x16b   :  { %738 = vmatpush3.bf16.msra.mxu1 %v787_v40 }
 0x16c   :  { %739 = vmatprep.subr.bf16.mxu1 %v965_v0 }
 0x16f   :  { %740 = vmatpush3.bf16.msra.mxu1 %v788_v48 }
 0x170   :  { %741 = vmatprep.subr.bf16.mxu1 %v965_v0 }
 0x173   :  { %742 = vmatpush3.bf16.msra.mxu1 %v789_v49 }
 0x229   :  { %v323_v42 = vpop.f32.mrb[0].mxu1 }
 0x22a   :  { %v324_v43 = vadd.f32 %v603_v41, %v323_v42  ;;  %v705_v44 = vpop.f32.mrb[1].mxu1 }
 0x22b   :  { %v326_v45 = vpop.f32.mrb[2].mxu1 }
 0x22c   :  { %v329_v46 = vpack.c.bf16 %v324_v43, %v324_v43  ;;  %v706_v47 = vpop.f32.mrb[3].mxu1 }
 0x22e   :  { %330 = vst [vmem:[#allocation11] sm:$0xf] %v329_v46  ;;  %724 = vmatmul.mubr.bf16.vlgmr.msra.gmra.mrb[4].mxu0 %v329_v46 }
 0x301   :  { %v436_v51 = vpop.f32.mrb[4].mxu0 }
 0x302   :  { %v437_v52 = vadd.f32 %v612_v50, %v436_v51  ;;  %v725_v53 = vpop.f32.mrb[5].mxu0 }
 0x303   :  { %v439_v54 = vpop.f32.mrb[6].mxu0 }
 0x304   :  { %v442_v55 = vmax.f32 %v437_v52, 0.0  ;;  %v726_v56 = vpop.f32.mrb[7].mxu0 }
 0x306   :  { %v443_v57 = vpack.c.bf16 %v442_v55, %v442_v55 }
 0x308   :  { %744 = vmatmul.mubr.bf16.vlgmr.msra.gmra.mrb[4].mxu1 %v443_v57 }
 0x309   :  { %915 = shalt.err (!%p912_p2)
}
 0x30a   :  { %s916_s14 = scalar_lea.hbm %s1181_s9, 64 }
 0x30b   :  { %p917_p3 = scmp.ne.s32.totalorder %s1181_s9, %s916_s14  ;;  %p920_p4 = scmp.lt.u32.totalorder %s916_s14, %s1181_s9 }
 0x30d   :  { %p922_p5 = pnand %p920_p4, %p917_p3 }
 0x30f   :  { %925 = shalt.err (!%p922_p5)
}
 0x310   :  { %572 = dma.vmem_to_hbm [thread:$0]  %s570_s17, 64, %s1181_s9, [#allocation4]   ;;  %v621_v58 = vld [vmem:[%s1180_s8] ss:$0 sm:$0xff] }
 0x311   :  { %s968_s27 = smov [#allocation12]  }
 0x312   :  { %s579_s29 = sshll.u32 %s968_s27, 4  ;;  %s580_s29 = int_to_ptr.vmem [resolvable:$true] %s579_s29 }
 0x313   :  { %s926_s9 = scalar_lea.vmem %s580_s29, 64  ;;  %p931_p7 = scmp.lt.s32.totalorder %s580_s29, %s580_s29 }
 0x314   :  { %p927_p6 = scmp.ne.s32.totalorder %s580_s29, %s926_s9  ;;  %p932_p8 = scmp.lt.s32.totalorder %s926_s9, %s926_s9 }
 0x316   :  { %p933_p9 = por %p932_p8, %p931_p7 }
 0x318   :  { %p934_p10 = pnand %p933_p9, %p927_p6 }
 0x3db   :  { %v549_v59 = vpop.f32.mrb[4].mxu1 }
 0x3dc   :  { %v550_v60 = vadd.f32 %v621_v58, %v549_v59  ;;  %v745_v61 = vpop.f32.mrb[5].mxu1 }
 0x3dd   :  { %v552_v62 = vpop.f32.mrb[6].mxu1 }
 0x3de   :  { %v630_v63 = vmul.f32 -1.442695, %v550_v60  ;;  %v746_v0 = vpop.f32.mrb[7].mxu1 }
 0x3e0   :  { %790 = vpow2.f32 %v630_v63 }
 0x3ea   :  { %v791_v1 = vpop.eup %790 }
 0x3eb   :  { %v558_v2 = vadd.f32 1.0, %v791_v1 }
 0x3ed   :  { %792 = vrcp.f32 %v558_v2 }
 0x3f7   :  { %v793_v3 = vpop.eup %792 }
 0x3f8   :  { %v561_v4 = vpack.c.bf16 %v793_v3, %v793_v3 }
 0x3fa   :  { %562 = vst [vmem:[#allocation12] sm:$0xf] %v561_v4 }
 0x3fb   :  { %937 = shalt.err (!%p934_p10)
}
 0x3fc   :  { %s938_s5 = scalar_lea.hbm %s1182_s10, 64 }
 0x3fd   :  { %p939_p11 = scmp.ne.s32.totalorder %s1182_s10, %s938_s5  ;;  %p942_p12 = scmp.lt.u32.totalorder %s938_s5, %s1182_s10 }
 0x3ff   :  { %p944_p13 = pnand %p942_p12, %p939_p11 }
 0x401   :  { %947 = shalt.err (!%p944_p13)
}
 0x402   :  { %582 = dma.vmem_to_hbm [thread:$0]  %s580_s29, 64, %s1182_s10, [#allocation13]  }
 0x403   :  { %954 = dma.done.wait [#allocation4], 64  }
 0x404   :  { %955 = vsyncadd [#allocation4], 4294967232 }
 0x405   :  { %956 = dma.done.wait [#allocation13], 64  }
 0x406   :  { %957 = vsyncadd [#allocation13], 4294967232 }
 0x407   :  { %589 = vsyncpa [#allocation3], 1 }
 0x408   :  { %590 = vsyncpa [#allocation6], 1 }
 0x409   :  { %591 = vsyncpa [#allocation9], 1 }
 0x40a   :  { %592 = vsyncpa [#allocation4], 1 }
 0x40b   :  { %593 = vsyncpa [#allocation13], 1 }

</bundles_post_ra>
